<compile_context>
chip_gen: v6e
topology: v6e:2x2x1
jax: 0.10.0
libtpu: 0.0.40
codegen_flags: <defaults>
</compile_context>

<pallas_src>
import functools

import jax
import jax.numpy as jnp
import numpy as np
from jax.experimental import pallas as pl
from jax.experimental.pallas import tpu as pltpu

_LANE = 128
_NEG_BIG = -1e30                   # "minus infinity" for masked class lanes
_TARGET_BLOCK_BYTES = 2 << 20      # ~2 MiB of logits per streamed class tile


def _focal_factor(one_minus_p, gamma):
    """(1 - p) ** gamma, using VPU multiplies for small integer gamma."""
    if float(gamma).is_integer() and 0 <= gamma <= 8:
        g = int(gamma)
        if g == 0:
            return jnp.ones_like(one_minus_p)
        acc = one_minus_p
        for _ in range(g - 1):
            acc = acc * one_minus_p
        return acc
    return one_minus_p ** gamma    # non-integer gamma: fall back to pow


def _focal_loss_kernel(x_ref, tlogit_ref, alpha_ref, out_ref, m_sc, l_sc,
                       *, n_classes, tc, gamma):
    kc = pl.program_id(1)

    @pl.when(kc == 0)
    def _():
        m_sc[...] = jnp.full(m_sc.shape, -jnp.inf, m_sc.dtype)
        l_sc[...] = jnp.zeros(l_sc.shape, l_sc.dtype)

    x = x_ref[...].astype(jnp.float32)       # (bn, tc); per-tile cast (bf16 ok)

    # Trace-time gate: only emitted when the last class tile is ragged.  The
    # where() only changes values on that tile; interior tiles see
    # col < n_classes everywhere (cheap VPU work hidden under the EUP exp).
    if n_classes % tc != 0:
        col = jax.lax.broadcasted_iota(jnp.int32, x.shape, 1) + kc * tc
        x = jnp.where(col < n_classes, x, _NEG_BIG)

    # Online softmax statistics along the class axis.
    m_new = jnp.maximum(m_sc[...], jnp.max(x, axis=1, keepdims=True))
    l_sc[...] = (jnp.exp(m_sc[...] - m_new) * l_sc[...]
                 + jnp.sum(jnp.exp(x - m_new), axis=1, keepdims=True))
    m_sc[...] = m_new

    @pl.when(kc == pl.num_programs(1) - 1)
    def _():
        # Stable log-softmax at the target class from the resident target logit.
        log_p = (tlogit_ref[...] - m_sc[...]) - jnp.log(l_sc[...])   # (bn, 1)
        probs = jnp.exp(log_p)
        focal = _focal_factor(1.0 - probs, gamma)
        out_ref[...] = -alpha_ref[...] * focal * log_p               # per-row loss


def focal_loss(inputs, target_ids, alpha=None, *, gamma=2.0, size_average=True,
               tc=None, bn=None):
    """inputs: (N, C) logits (f32 or bf16); target_ids: (N,) int class indices
    (one-hot targets can be converted by the caller via argmax, matching the
    PyTorch forward's index-extraction loop); alpha: optional (C,) / (C, 1)
    per-class weights (module default = ones).  Returns a scalar f32 loss."""
    inputs = jnp.asarray(inputs)
    if inputs.dtype not in (jnp.float32, jnp.bfloat16):
        inputs = inputs.astype(jnp.float32)      # no-op for the common cases
    N, C = inputs.shape
    target_ids = jnp.asarray(target_ids, jnp.int32).reshape(N, 1)

    # Tiny per-row gathers done once in the wrapper (N elements each).
    t_logit = jnp.take_along_axis(inputs, target_ids, axis=1).astype(jnp.float32)
    if alpha is None:
        alpha_rows = jnp.ones((N, 1), jnp.float32)
    else:
        alpha_vec = jnp.asarray(alpha, jnp.float32).reshape(-1)
        alpha_rows = jnp.take(alpha_vec, target_ids[:, 0]).reshape(N, 1)

    itemsize = jnp.dtype(inputs.dtype).itemsize

    # Batch tile: full batch when small; otherwise 256-row tiles (multiple of
    # 8 sublanes) so the "parallel" axis can use both v7x TensorCores and the
    # VMEM working set stays bounded for large N.
    if bn is None:
        bn = N if N <= 256 else 256
    assert bn == N or bn % 8 == 0, "batch tile must be N or a multiple of 8"

    # Class tile: one full-extent block when it fits the byte budget (no lane
    # padding / masking needed), else ~2 MiB lane-aligned streamed tiles.
    if tc is None:
        if bn * C * itemsize <= _TARGET_BLOCK_BYTES:
            tc = C
        else:
            tc = max(_LANE,
                     (_TARGET_BLOCK_BYTES // (bn * itemsize)) // _LANE * _LANE)
    else:
        tc = min(int(tc), C)
    assert tc == C or tc % _LANE == 0, "class tile must be 128-lane aligned"

    nb = pl.cdiv(N, bn)
    nc = pl.cdiv(C, tc)

    kernel = functools.partial(_focal_loss_kernel, n_classes=C, tc=tc,
                               gamma=float(gamma))

    # Estimated VMEM: double-buffered logit stream + in-kernel f32 temps.
    block_bytes = bn * tc * itemsize
    vmem_needed = 2 * block_bytes + 2 * bn * tc * 4 + (1 << 20)
    cp_kwargs = dict(dimension_semantics=("parallel", "arbitrary"))
    if vmem_needed > (16 << 20):
        cp_kwargs["vmem_limit_bytes"] = int(min(vmem_needed, 32 << 20))

    per_row = pl.pallas_call(
        kernel,
        out_shape=jax.ShapeDtypeStruct((N, 1), jnp.float32),
        grid_spec=pltpu.PrefetchScalarGridSpec(
            num_scalar_prefetch=0,
            grid=(nb, nc),
            in_specs=[
                pl.BlockSpec((bn, tc), lambda b, kc: (b, kc)),  # logits: streamed
                pl.BlockSpec((bn, 1), lambda b, kc: (b, 0)),    # target logit
                pl.BlockSpec((bn, 1), lambda b, kc: (b, 0)),    # alpha[target]
            ],
            out_specs=pl.BlockSpec((bn, 1), lambda b, kc: (b, 0)),
            scratch_shapes=[
                pltpu.VMEM((bn, 1), jnp.float32),   # running row max
                pltpu.VMEM((bn, 1), jnp.float32),   # running exp-sum
            ],
        ),
        compiler_params=pltpu.CompilerParams(**cp_kwargs),
    )(inputs, t_logit, alpha_rows)

    total = jnp.sum(per_row)
    return total / N if size_average else total


def _reference_focal_loss(inputs, target_ids, alpha=None,
                          gamma=2.0, size_average=True):
    N, C = inputs.shape
    p = jax.nn.softmax(inputs.astype(jnp.float32), axis=1)
    probs = jnp.take_along_axis(p, target_ids.reshape(N, 1), axis=1)
    if alpha is None:
        a = jnp.ones((N, 1), jnp.float32)
    else:
        a = jnp.take(jnp.asarray(alpha, jnp.float32).reshape(-1),
                     target_ids.reshape(-1)).reshape(N, 1)
    batch_loss = -a * (1.0 - probs) ** gamma * jnp.log(probs)
    return jnp.mean(batch_loss) if size_average else jnp.sum(batch_loss)


if __name__ == "__main__":
    # The PyTorch forward hard-codes an 8-row batch; C is a small stand-in for
    # class_num=15587 and is deliberately not a lane multiple.
    N, C = 8, 500
    key = jax.random.PRNGKey(0)
    k_x, k_t, k_x2, k_t2 = jax.random.split(key, 4)

    inputs = jax.random.normal(k_x, (N, C), dtype=jnp.float32)
    target_ids = jax.random.randint(k_t, (N,), 0, C, dtype=jnp.int32)
    alpha = jnp.ones((C, 1), dtype=jnp.float32)       # module default alpha

    ref = jax.block_until_ready(_reference_focal_loss(inputs, target_ids, alpha))

    # Default path: single full-extent class block, single batch tile.
    loss = jax.block_until_ready(focal_loss(inputs, target_ids, alpha))
    np.testing.assert_allclose(np.asarray(loss), np.asarray(ref),
                               rtol=1e-5, atol=1e-6)

    # Streamed class tiles with a ragged last tile (500 % 128 != 0):
    # exercises the in-kernel lane mask + online-softmax carry.
    loss_t = jax.block_until_ready(focal_loss(inputs, target_ids, alpha, tc=128))
    np.testing.assert_allclose(np.asarray(loss_t), np.asarray(ref),
                               rtol=1e-5, atol=1e-6)

    # bf16 logits streamed natively (cast to f32 per tile inside the kernel).
    inputs_bf16 = inputs.astype(jnp.bfloat16)
    ref_bf16 = jax.block_until_ready(
        _reference_focal_loss(inputs_bf16, target_ids, alpha))
    loss_bf16 = jax.block_until_ready(focal_loss(inputs_bf16, target_ids, alpha))
    np.testing.assert_allclose(np.asarray(loss_bf16), np.asarray(ref_bf16),
                               rtol=2e-5, atol=1e-6)

    # Batch-tiled "parallel" path with a ragged last batch tile and
    # size_average=False (sum reduction).
    N2, C2 = 24, 300
    inputs2 = jax.random.normal(k_x2, (N2, C2), dtype=jnp.float32)
    target_ids2 = jax.random.randint(k_t2, (N2,), 0, C2, dtype=jnp.int32)
    ref2 = jax.block_until_ready(
        _reference_focal_loss(inputs2, target_ids2, None, size_average=False))
    loss2 = jax.block_until_ready(
        focal_loss(inputs2, target_ids2, None, size_average=False, bn=16, tc=128))
    np.testing.assert_allclose(np.asarray(loss2), np.asarray(ref2),
                               rtol=1e-5, atol=1e-5)

    print("KERNEL_OK")
</pallas_src>

<mosaic_0001>
module attributes {stable_mosaic.version = 11 : i64} {
  func.func @_focal_loss_kernel(%arg0: i32, %arg1: i32, %arg2: memref<8x500xf32, #tpu.memory_space<vmem>>, %arg3: memref<8x1xf32, #tpu.memory_space<vmem>>, %arg4: memref<8x1xf32, #tpu.memory_space<vmem>>, %arg5: memref<8x1xf32, #tpu.memory_space<vmem>>, %arg6: memref<8x1xf32, #tpu.memory_space<vmem>>, %arg7: memref<8x1xf32, #tpu.memory_space<vmem>>) attributes {dimension_semantics = [#tpu.dimension_semantics<parallel>, #tpu.dimension_semantics<arbitrary>], iteration_bounds = array<i64: 1, 1>, scalar_prefetch = 0 : i64, scratch_operands = 2 : i64, tpu.core_type = #tpu.core_type<tc>, window_params = [{transform_indices = @transform_0, window_bounds = array<i64: 8, 500>}, {transform_indices = @transform_1, window_bounds = array<i64: 8, 1>}, {transform_indices = @transform_2, window_bounds = array<i64: 8, 1>}, {transform_indices = @transform_3, window_bounds = array<i64: 8, 1>}]} {
    %c0_i32 = arith.constant 0 : i32
    %0 = arith.cmpi eq, %arg1, %c0_i32 : i32
    %1 = arith.extui %0 : i1 to i32
    %c0_i32_0 = arith.constant 0 : i32
    %2 = arith.cmpi ne, %1, %c0_i32_0 : i32
    scf.if %2 {
      %cst_15 = arith.constant 0xFF800000 : f32
      %24 = vector.broadcast %cst_15 : f32 to vector<8x1xf32>
      %c0_16 = arith.constant 0 : index
      %c0_17 = arith.constant 0 : index
      %25 = vector.load %arg6[%c0_16, %c0_17] : memref<8x1xf32, #tpu.memory_space<vmem>>, vector<8x1xf32>
      tpu.vector_store %arg6[%c0_16, %c0_17], %24 {strides = array<i32>} : memref<8x1xf32, #tpu.memory_space<vmem>>, vector<8x1xf32>,
      %cst_18 = arith.constant 0.000000e+00 : f32
      %26 = vector.broadcast %cst_18 : f32 to vector<8x1xf32>
      %c0_19 = arith.constant 0 : index
      %c0_20 = arith.constant 0 : index
      %27 = vector.load %arg7[%c0_19, %c0_20] : memref<8x1xf32, #tpu.memory_space<vmem>>, vector<8x1xf32>
      tpu.vector_store %arg7[%c0_19, %c0_20], %26 {strides = array<i32>} : memref<8x1xf32, #tpu.memory_space<vmem>>, vector<8x1xf32>,
    } else {
    }
    %c0 = arith.constant 0 : index
    %c0_1 = arith.constant 0 : index
    %3 = vector.load %arg2[%c0, %c0_1] : memref<8x500xf32, #tpu.memory_space<vmem>>, vector<8x500xf32>
    %c0_2 = arith.constant 0 : index
    %c0_3 = arith.constant 0 : index
    %4 = vector.load %arg6[%c0_2, %c0_3] : memref<8x1xf32, #tpu.memory_space<vmem>>, vector<8x1xf32>
    %cst = arith.constant dense<0xFF800000> : vector<8xf32>
    %5 = vector.multi_reduction <maximumf>, %3, %cst [1] : vector<8x500xf32> to vector<8xf32>
    %6 = vector.shape_cast %5 : vector<8xf32> to vector<8x1xf32>
    %7 = arith.maximumf %4, %6 : vector<8x1xf32>
    %c0_4 = arith.constant 0 : index
    %c0_5 = arith.constant 0 : index
    %8 = vector.load %arg6[%c0_4, %c0_5] : memref<8x1xf32, #tpu.memory_space<vmem>>, vector<8x1xf32>
    %9 = arith.subf %8, %7 : vector<8x1xf32>
    %10 = math.exp %9 : vector<8x1xf32>
    %c0_6 = arith.constant 0 : index
    %c0_7 = arith.constant 0 : index
    %11 = vector.load %arg7[%c0_6, %c0_7] : memref<8x1xf32, #tpu.memory_space<vmem>>, vector<8x1xf32>
    %12 = arith.mulf %10, %11 : vector<8x1xf32>
    %13 = vector.broadcast %7 : vector<8x1xf32> to vector<8x500xf32>
    %14 = arith.subf %3, %13 : vector<8x500xf32>
    %15 = math.exp %14 : vector<8x500xf32>
    %cst_8 = arith.constant dense<0.000000e+00> : vector<8xf32>
    %16 = vector.multi_reduction <add>, %15, %cst_8 [1] : vector<8x500xf32> to vector<8xf32>
    %17 = vector.shape_cast %16 : vector<8xf32> to vector<8x1xf32>
    %18 = arith.addf %12, %17 : vector<8x1xf32>
    %c0_9 = arith.constant 0 : index
    %c0_10 = arith.constant 0 : index
    %19 = vector.load %arg7[%c0_9, %c0_10] : memref<8x1xf32, #tpu.memory_space<vmem>>, vector<8x1xf32>
    tpu.vector_store %arg7[%c0_9, %c0_10], %18 {strides = array<i32>} : memref<8x1xf32, #tpu.memory_space<vmem>>, vector<8x1xf32>,
    %c0_11 = arith.constant 0 : index
    %c0_12 = arith.constant 0 : index
    %20 = vector.load %arg6[%c0_11, %c0_12] : memref<8x1xf32, #tpu.memory_space<vmem>>, vector<8x1xf32>
    tpu.vector_store %arg6[%c0_11, %c0_12], %7 {strides = array<i32>} : memref<8x1xf32, #tpu.memory_space<vmem>>, vector<8x1xf32>,
    %c0_i32_13 = arith.constant 0 : i32
    %21 = arith.cmpi eq, %arg1, %c0_i32_13 : i32
    %22 = arith.extui %21 : i1 to i32
    %c0_i32_14 = arith.constant 0 : i32
    %23 = arith.cmpi ne, %22, %c0_i32_14 : i32
    scf.if %23 {
      %c0_15 = arith.constant 0 : index
      %c0_16 = arith.constant 0 : index
      %24 = vector.load %arg3[%c0_15, %c0_16] : memref<8x1xf32, #tpu.memory_space<vmem>>, vector<8x1xf32>
      %c0_17 = arith.constant 0 : index
      %c0_18 = arith.constant 0 : index
      %25 = vector.load %arg6[%c0_17, %c0_18] : memref<8x1xf32, #tpu.memory_space<vmem>>, vector<8x1xf32>
      %26 = arith.subf %24, %25 : vector<8x1xf32>
      %c0_19 = arith.constant 0 : index
      %c0_20 = arith.constant 0 : index
      %27 = vector.load %arg7[%c0_19, %c0_20] : memref<8x1xf32, #tpu.memory_space<vmem>>, vector<8x1xf32>
      %28 = math.log %27 : vector<8x1xf32>
      %29 = arith.subf %26, %28 : vector<8x1xf32>
      %30 = math.exp %29 : vector<8x1xf32>
      %cst_21 = arith.constant 1.000000e+00 : f32
      %31 = vector.broadcast %cst_21 : f32 to vector<8x1xf32>
      %32 = arith.subf %31, %30 : vector<8x1xf32>
      %33 = arith.mulf %32, %32 : vector<8x1xf32>
      %c0_22 = arith.constant 0 : index
      %c0_23 = arith.constant 0 : index
      %34 = vector.load %arg4[%c0_22, %c0_23] : memref<8x1xf32, #tpu.memory_space<vmem>>, vector<8x1xf32>
      %cst_24 = arith.constant 0.000000e+00 : f32
      %35 = vector.broadcast %cst_24 : f32 to vector<8x1xf32>
      %36 = arith.subf %35, %34 : vector<8x1xf32>
      %37 = arith.mulf %36, %33 : vector<8x1xf32>
      %38 = arith.mulf %37, %29 : vector<8x1xf32>
      %c0_25 = arith.constant 0 : index
      %c0_26 = arith.constant 0 : index
      %39 = vector.load %arg5[%c0_25, %c0_26] : memref<8x1xf32, #tpu.memory_space<vmem>>, vector<8x1xf32>
      tpu.vector_store %arg5[%c0_25, %c0_26], %38 {strides = array<i32>} : memref<8x1xf32, #tpu.memory_space<vmem>>, vector<8x1xf32>,
    } else {
    }
    return
  }
  func.func @transform_0(%arg0: i32, %arg1: i32) -> (i32, i32) {
    %c0_i32 = arith.constant 0 : i32
    return %arg0, %arg1 : i32, i32
  }
  func.func @transform_1(%arg0: i32, %arg1: i32) -> (i32, i32) {
    %c0_i32 = arith.constant 0 : i32
    %c0_i32_0 = arith.constant 0 : i32
    return %arg0, %c0_i32 : i32, i32
  }
  func.func @transform_2(%arg0: i32, %arg1: i32) -> (i32, i32) {
    %c0_i32 = arith.constant 0 : i32
    %c0_i32_0 = arith.constant 0 : i32
    return %arg0, %c0_i32 : i32, i32
  }
  func.func @transform_3(%arg0: i32, %arg1: i32) -> (i32, i32) {
    %c0_i32 = arith.constant 0 : i32
    %c0_i32_0 = arith.constant 0 : i32
    return %arg0, %c0_i32 : i32, i32
  }
}

</mosaic_0001>

<bundles_post_ra>
// kernel: tpu_custom_call.1
= control target key start
LH: loop header
LB: loop body
LE: loop exit
PB: predicated region body
PF: predicated region fallthrough
CT: control target
= control target key end

     0   :  { %8 = vsyncpa [#allocation5], 0  ;;  %s143_s12 = smov [#allocation4]   ;;  %s186_s0 = inlined_call_operand.hbm [shape: f32[8,500], index: 0, kind: input, shape index: {}]   ;;  %s187_s1 = inlined_call_operand.vmem [shape: f32[8,1], index: 1, kind: input, shape index: {}]   ;;  %s188_s2 = inlined_call_operand.vmem [shape: f32[8,1], index: 2, kind: input, shape index: {}]   ;;  %s189_s3 = inlined_call_operand.vmem [shape: f32[8,1], index: 3, kind: output, shape index: {}]  }
   0x1   :  { %s15_s13 = sshll.u32 %s143_s12, 4  ;;  %s16_s13 = int_to_ptr.vmem [resolvable:$true] %s15_s13 }
   0x2   :  { %s129_s14 = scalar_lea.vmem %s16_s13, 512  ;;  %p134_p1 = scmp.lt.s32.totalorder %s16_s13, %s16_s13 }
   0x3   :  { %p130_p0 = scmp.ne.s32.totalorder %s16_s13, %s129_s14  ;;  %p135_p2 = scmp.lt.s32.totalorder %s129_s14, %s129_s14 }
   0x5   :  { %p136_p3 = por %p135_p2, %p134_p1 }
   0x7   :  { %p137_p4 = pnand %p136_p3, %p130_p0 }
   0x9   :  { %140 = shalt.err (!%p137_p4)
}
   0xa   :  { %18 = dma.hbm_to_vmem [thread:$0]  %s186_s0, 512, %s16_s13, [#allocation5]  }
   0xb   :  { %141 = dma.done.wait [#allocation5], 512  }
   0xc   :  { %142 = vsyncadd [#allocation5], 4294966784  ;;  %vm30_vm0 = vcmask 7168   ;;  %v144_v0 = vmov -inf   ;;  %vm38_vm1 = vcmask 949248   ;;  %v33_v1 = vld [vmem:[#allocation4] sm:$0xff] }
   0xd   :  { %31 = vst.msk [vmem:[#allocation2] sm:$0xff] %vm30_vm0, %v144_v0  ;;  %v34_v2 = vld [vmem:[#allocation4 + $0x8] sm:$0xff]  ;;  %v35_v3 = vld [vmem:[#allocation4 + $0x10] sm:$0xff]  ;;  %v36_v4 = vld [vmem:[#allocation4 + $0x18] sm:$0xff]  ;;  %v145_v9 = vmov 0   ;;  %v146_v10 = vmov 0.0  }
   0xe   :  { %v40_v5 = vmax.f32 %v33_v1, %v34_v2  ;;  %v39_v6 = vsel %vm38_vm1, %v36_v4, -inf  ;;  %106 = vset.pattern.permute.xlu0 %v145_v9  ;;  %32 = vst.msk [vmem:[#allocation3] sm:$0xff] %vm30_vm0, %v146_v10  ;;  %v81_v39 = vld [vmem:[%s187_s1] sm:$0xff] }
   0xf   :  { %v41_v7 = vmax.f32 %v35_v3, %v39_v6  ;;  %v92_v46 = vld [vmem:[%s188_s2] sm:$0xff] }
  0x10   :  { %v93_v48 = vsub.f32 0.0, %v92_v46 }
  0x11   :  { %v42_v8 = vmax.f32 %v40_v5, %v41_v7 }
  0x13   :  { %43 = vmax.xlane.f32.xlu0 %v42_v8 }
  0x14   :  { %v37_v11 = vld [vmem:[#allocation2] sm:$0xff] }
  0x15   :  { %v49_v34 = vld [vmem:[#allocation3] sm:$0xff] }
  0x9c   :  { %v44_v12 = vpop.xlane.xlu0 %43 }
  0x9d   :  { %v45_v13 = vmax.f32 %v37_v11, %v44_v12 }
  0x9f   :  { %v46_v14 = vsub.f32 %v37_v11, %v45_v13  ;;  %77 = vst.msk [vmem:[#allocation2] sm:$0xff] %vm30_vm0, %v45_v13  ;;  %53 = vperm.xlu0 %106, %v45_v13  }
  0xa1   :  { %v47_v32 = vmul.f32 1.442695, %v46_v14 }
  0xa6   :  { %v82_v40 = vld [vmem:[#allocation2] sm:$0xff] }
  0xa7   :  { %v83_v42 = vsub.f32 %v81_v39, %v82_v40 }
 0x11a   :  { %v54_v15 = vpop.permute.xlu0 %53 }
 0x11b   :  { %v56_v16 = vsub.f32 %v33_v1, %v54_v15  ;;  %v57_v17 = vsub.f32 %v34_v2, %v54_v15  ;;  %v58_v18 = vsub.f32 %v35_v3, %v54_v15  ;;  %v59_v19 = vsub.f32 %v36_v4, %v54_v15 }
 0x11d   :  { %v60_v20 = vmul.f32 1.442695, %v56_v16  ;;  %v62_v21 = vmul.f32 1.442695, %v57_v17  ;;  %v64_v22 = vmul.f32 1.442695, %v58_v18 }
 0x11e   :  { %v66_v23 = vmul.f32 1.442695, %v59_v19 }
 0x11f   :  { %107 = vpow2.f32 %v60_v20 }
 0x120   :  { %109 = vpow2.f32 %v62_v21 }
 0x121   :  { %111 = vpow2.f32 %v64_v22 }
 0x122   :  { %113 = vpow2.f32 %v66_v23 }
 0x123   :  { %115 = vpow2.f32 %v47_v32 }
 0x12c   :  { %v108_v24 = vpop.eup %107 }
 0x12d   :  { %v110_v25 = vpop.eup %109 }
 0x12e   :  { %v112_v26 = vpop.eup %111  ;;  %v68_v27 = vadd.f32 %v110_v25, %v108_v24 }
 0x12f   :  { %v114_v28 = vpop.eup %113 }
 0x130   :  { %v69_v29 = vadd.f32 %v112_v26, %v68_v27  ;;  %v70_v30 = vsel %vm38_vm1, %v114_v28, 0.0  ;;  %v116_v33 = vpop.eup %115 }
 0x131   :  { %v50_v35 = vmul.f32 %v116_v33, %v49_v34 }
 0x132   :  { %v71_v31 = vadd.f32 %v70_v30, %v69_v29 }
 0x134   :  { %72 = vadd.xlane.f32.xlu1 %v71_v31 }
 0x1bd   :  { %v73_v36 = vpop.xlane.xlu1 %72 }
 0x1be   :  { %v74_v37 = vadd.f32 %v73_v36, %v50_v35 }
 0x1c0   :  { %76 = vst.msk [vmem:[#allocation3] sm:$0xff] %vm30_vm0, %v74_v37 }
 0x1c7   :  { %v84_v38 = vld [vmem:[#allocation3] sm:$0xff] }
 0x1c8   :  { %117 = vlog2.f32 %v84_v38 }
 0x1d5   :  { %v118_v41 = vpop.eup %117 }
 0x1d6   :  { %v86_v43 = vmul.f32 0.6931472, %v118_v41 }
 0x1d8   :  { %v87_v44 = vsub.f32 %v83_v42, %v86_v43 }
 0x1da   :  { %v88_v45 = vmul.f32 1.442695, %v87_v44 }
 0x1dc   :  { %119 = vpow2.f32 %v88_v45 }
 0x1e9   :  { %v120_v47 = vpop.eup %119 }
 0x1ea   :  { %v90_v49 = vsub.f32 1.0, %v120_v47 }
 0x1ec   :  { %v91_v50 = vmul.f32 %v90_v49, %v90_v49 }
 0x1ee   :  { %v94_v51 = vmul.f32 %v93_v48, %v91_v50 }
 0x1f0   :  { %v95_v52 = vmul.f32 %v94_v51, %v87_v44 }
 0x1f2   :  { %96 = vst.msk [vmem:[%s189_s3] sm:$0xff] %vm30_vm0, %v95_v52 }
 0x1f3   :  { %101 = vsyncpa [#allocation5], 1 }

</bundles_post_ra>
